<compile_context>
chip_gen: v7x
topology: tpu7x:2x2x1
jax: 0.10.0
libtpu: 0.0.40
codegen_flags: <defaults>
</compile_context>

<pallas_src>
import jax
import jax.numpy as jnp
from jax.experimental import pallas as pl
from jax.experimental.pallas import tpu as pltpu

IN_FEATURES = 10
OUT_FEATURES = 1
_LANE = 128


def _fc1_sigmoid_kernel(x_ref, w_ref, b_ref, o_ref):
    # x_ref: [10, TB] in VMEM (features on sublanes, batch on lanes)
    # w_ref: [10] f32 in SMEM, b_ref: [1] f32 in SMEM, o_ref: [1, TB]
    z = jnp.full(o_ref.shape, b_ref[0], dtype=jnp.float32)
    for k in range(IN_FEATURES):                          # unrolled VPU MACs
        xk = x_ref[pl.ds(k, 1), :].astype(jnp.float32)    # (1, TB), lane-dense
        z = z + w_ref[k] * xk
    # sigmoid(z) = 0.5 * (tanh(z/2) + 1): one EUP transcendental, no VALU divide
    o_ref[...] = (0.5 * (jnp.tanh(0.5 * z) + 1.0)).astype(o_ref.dtype)


def _round_up(n, m):
    return ((n + m - 1) // m) * m


def network1l_forward(x, w, b, *, block_b=512, min_pallas_batch=0):
    """x: [B, 10], w: [10] (== Linear.weight[0]), b: [1] -> [B, 1]."""
    B = x.shape[0]
    if B < min_pallas_batch:
        # Tiny batches: fixed kernel/grid-step overhead dominates; let XLA fuse.
        return jax.nn.sigmoid(x @ w.reshape(IN_FEATURES, 1) + b.reshape(1, 1))

    assert block_b % _LANE == 0
    tb = min(block_b, _round_up(B, _LANE))    # lane-multiple tile, <= block_b
    b_pad = _round_up(B, tb)
    grid = (pl.cdiv(b_pad, tb),)

    # Wrapper-side layout plumbing only: pad batch to a tile multiple and put
    # the batch dimension on lanes (feature-major [10, B_pad]).
    x_t = jnp.pad(x, ((0, b_pad - B), (0, 0))).T          # [10, B_pad]

    y_t = pl.pallas_call(
        _fc1_sigmoid_kernel,
        out_shape=jax.ShapeDtypeStruct((OUT_FEATURES, b_pad), x.dtype),
        grid=grid,
        in_specs=[
            pl.BlockSpec((IN_FEATURES, tb), lambda i: (0, i)),
            pl.BlockSpec(memory_space=pltpu.MemorySpace.SMEM),   # w: scalars
            pl.BlockSpec(memory_space=pltpu.MemorySpace.SMEM),   # b: scalar
        ],
        out_specs=pl.BlockSpec((OUT_FEATURES, tb), lambda i: (0, i)),
        compiler_params=pltpu.CompilerParams(
            dimension_semantics=("parallel",)),
    )(x_t, w.astype(jnp.float32), b.astype(jnp.float32))

    return y_t[:, :B].T                                   # [B, 1]


def init_params(key):
    # Matches nn.Linear(10, 1) default init: U(-1/sqrt(in), 1/sqrt(in)).
    kw, kb = jax.random.split(key)
    bound = 1.0 / jnp.sqrt(jnp.float32(IN_FEATURES))
    w = jax.random.uniform(kw, (OUT_FEATURES, IN_FEATURES), jnp.float32,
                           minval=-bound, maxval=bound)
    b = jax.random.uniform(kb, (OUT_FEATURES,), jnp.float32,
                           minval=-bound, maxval=bound)
    return w.reshape(IN_FEATURES), b                      # w stored as [10] row


if __name__ == "__main__":
    key = jax.random.PRNGKey(0)
    k_x, k_p, k_x2 = jax.random.split(key, 3)

    w, b = init_params(k_p)

    # Small-shape check (single grid step), matching the module's [B, 10] input.
    B = 8
    x = jax.random.normal(k_x, (B, IN_FEATURES), dtype=jnp.float32)
    y = network1l_forward(x, w, b)
    jax.block_until_ready(y)
    y_ref = jax.nn.sigmoid(x @ w.reshape(IN_FEATURES, OUT_FEATURES) + b)
    assert y.shape == (B, OUT_FEATURES)
    assert jnp.allclose(y, y_ref, atol=1e-5, rtol=1e-5)

    # Multi-tile check (exercises the batch grid / pipelined DMA path).
    B2 = 600
    x2 = jax.random.normal(k_x2, (B2, IN_FEATURES), dtype=jnp.float32)
    y2 = network1l_forward(x2, w, b)
    jax.block_until_ready(y2)
    y2_ref = jax.nn.sigmoid(x2 @ w.reshape(IN_FEATURES, OUT_FEATURES) + b)
    assert y2.shape == (B2, OUT_FEATURES)
    assert jnp.allclose(y2, y2_ref, atol=1e-5, rtol=1e-5)

    print("KERNEL_OK")
</pallas_src>

<mosaic_0001>
module attributes {stable_mosaic.version = 11 : i64} {
  func.func @_fc1_sigmoid_kernel(%arg0: i32, %arg1: memref<10x128xf32, #tpu.memory_space<vmem>>, %arg2: memref<10xf32, #tpu.memory_space<smem>>, %arg3: memref<1xf32, #tpu.memory_space<smem>>, %arg4: memref<1x128xf32, #tpu.memory_space<vmem>>) attributes {dimension_semantics = [#tpu.dimension_semantics<parallel>], iteration_bounds = array<i64: 1>, scalar_prefetch = 0 : i64, scratch_operands = 0 : i64, tpu.core_type = #tpu.core_type<tc>, window_params = [{transform_indices = @transform_0, window_bounds = array<i64: 10, 128>}, {transform_indices = @transform_1, window_bounds = array<i64: 10>}, {transform_indices = @transform_2, window_bounds = array<i64: 1>}, {transform_indices = @transform_3, window_bounds = array<i64: 1, 128>}]} {
    %c0 = arith.constant 0 : index
    %0 = memref.load %arg3[%c0] : memref<1xf32, #tpu.memory_space<smem>>
    %1 = vector.broadcast %0 : f32 to vector<1x128xf32>
    %c0_0 = arith.constant 0 : index
    %c0_1 = arith.constant 0 : index
    %2 = vector.load %arg1[%c0_0, %c0_1] : memref<10x128xf32, #tpu.memory_space<vmem>>, vector<1x128xf32>
    %c0_2 = arith.constant 0 : index
    %3 = memref.load %arg2[%c0_2] : memref<10xf32, #tpu.memory_space<smem>>
    %4 = vector.broadcast %3 : f32 to vector<1x128xf32>
    %5 = arith.mulf %4, %2 : vector<1x128xf32>
    %6 = arith.addf %1, %5 : vector<1x128xf32>
    %c1 = arith.constant 1 : index
    %c0_3 = arith.constant 0 : index
    %7 = vector.load %arg1[%c1, %c0_3] : memref<10x128xf32, #tpu.memory_space<vmem>>, vector<1x128xf32>
    %c1_4 = arith.constant 1 : index
    %8 = memref.load %arg2[%c1_4] : memref<10xf32, #tpu.memory_space<smem>>
    %9 = vector.broadcast %8 : f32 to vector<1x128xf32>
    %10 = arith.mulf %9, %7 : vector<1x128xf32>
    %11 = arith.addf %6, %10 : vector<1x128xf32>
    %c2 = arith.constant 2 : index
    %c0_5 = arith.constant 0 : index
    %12 = vector.load %arg1[%c2, %c0_5] : memref<10x128xf32, #tpu.memory_space<vmem>>, vector<1x128xf32>
    %c2_6 = arith.constant 2 : index
    %13 = memref.load %arg2[%c2_6] : memref<10xf32, #tpu.memory_space<smem>>
    %14 = vector.broadcast %13 : f32 to vector<1x128xf32>
    %15 = arith.mulf %14, %12 : vector<1x128xf32>
    %16 = arith.addf %11, %15 : vector<1x128xf32>
    %c3 = arith.constant 3 : index
    %c0_7 = arith.constant 0 : index
    %17 = vector.load %arg1[%c3, %c0_7] : memref<10x128xf32, #tpu.memory_space<vmem>>, vector<1x128xf32>
    %c3_8 = arith.constant 3 : index
    %18 = memref.load %arg2[%c3_8] : memref<10xf32, #tpu.memory_space<smem>>
    %19 = vector.broadcast %18 : f32 to vector<1x128xf32>
    %20 = arith.mulf %19, %17 : vector<1x128xf32>
    %21 = arith.addf %16, %20 : vector<1x128xf32>
    %c4 = arith.constant 4 : index
    %c0_9 = arith.constant 0 : index
    %22 = vector.load %arg1[%c4, %c0_9] : memref<10x128xf32, #tpu.memory_space<vmem>>, vector<1x128xf32>
    %c4_10 = arith.constant 4 : index
    %23 = memref.load %arg2[%c4_10] : memref<10xf32, #tpu.memory_space<smem>>
    %24 = vector.broadcast %23 : f32 to vector<1x128xf32>
    %25 = arith.mulf %24, %22 : vector<1x128xf32>
    %26 = arith.addf %21, %25 : vector<1x128xf32>
    %c5 = arith.constant 5 : index
    %c0_11 = arith.constant 0 : index
    %27 = vector.load %arg1[%c5, %c0_11] : memref<10x128xf32, #tpu.memory_space<vmem>>, vector<1x128xf32>
    %c5_12 = arith.constant 5 : index
    %28 = memref.load %arg2[%c5_12] : memref<10xf32, #tpu.memory_space<smem>>
    %29 = vector.broadcast %28 : f32 to vector<1x128xf32>
    %30 = arith.mulf %29, %27 : vector<1x128xf32>
    %31 = arith.addf %26, %30 : vector<1x128xf32>
    %c6 = arith.constant 6 : index
    %c0_13 = arith.constant 0 : index
    %32 = vector.load %arg1[%c6, %c0_13] : memref<10x128xf32, #tpu.memory_space<vmem>>, vector<1x128xf32>
    %c6_14 = arith.constant 6 : index
    %33 = memref.load %arg2[%c6_14] : memref<10xf32, #tpu.memory_space<smem>>
    %34 = vector.broadcast %33 : f32 to vector<1x128xf32>
    %35 = arith.mulf %34, %32 : vector<1x128xf32>
    %36 = arith.addf %31, %35 : vector<1x128xf32>
    %c7 = arith.constant 7 : index
    %c0_15 = arith.constant 0 : index
    %37 = vector.load %arg1[%c7, %c0_15] : memref<10x128xf32, #tpu.memory_space<vmem>>, vector<1x128xf32>
    %c7_16 = arith.constant 7 : index
    %38 = memref.load %arg2[%c7_16] : memref<10xf32, #tpu.memory_space<smem>>
    %39 = vector.broadcast %38 : f32 to vector<1x128xf32>
    %40 = arith.mulf %39, %37 : vector<1x128xf32>
    %41 = arith.addf %36, %40 : vector<1x128xf32>
    %c8 = arith.constant 8 : index
    %c0_17 = arith.constant 0 : index
    %42 = vector.load %arg1[%c8, %c0_17] : memref<10x128xf32, #tpu.memory_space<vmem>>, vector<1x128xf32>
    %c8_18 = arith.constant 8 : index
    %43 = memref.load %arg2[%c8_18] : memref<10xf32, #tpu.memory_space<smem>>
    %44 = vector.broadcast %43 : f32 to vector<1x128xf32>
    %45 = arith.mulf %44, %42 : vector<1x128xf32>
    %46 = arith.addf %41, %45 : vector<1x128xf32>
    %c9 = arith.constant 9 : index
    %c0_19 = arith.constant 0 : index
    %47 = vector.load %arg1[%c9, %c0_19] : memref<10x128xf32, #tpu.memory_space<vmem>>, vector<1x128xf32>
    %c9_20 = arith.constant 9 : index
    %48 = memref.load %arg2[%c9_20] : memref<10xf32, #tpu.memory_space<smem>>
    %49 = vector.broadcast %48 : f32 to vector<1x128xf32>
    %50 = arith.mulf %49, %47 : vector<1x128xf32>
    %51 = arith.addf %46, %50 : vector<1x128xf32>
    %cst = arith.constant 5.000000e-01 : f32
    %52 = vector.broadcast %cst : f32 to vector<1x128xf32>
    %53 = arith.mulf %52, %51 : vector<1x128xf32>
    %54 = math.tanh %53 : vector<1x128xf32>
    %cst_21 = arith.constant 1.000000e+00 : f32
    %55 = vector.broadcast %cst_21 : f32 to vector<1x128xf32>
    %56 = arith.addf %54, %55 : vector<1x128xf32>
    %cst_22 = arith.constant 5.000000e-01 : f32
    %57 = vector.broadcast %cst_22 : f32 to vector<1x128xf32>
    %58 = arith.mulf %57, %56 : vector<1x128xf32>
    %c0_23 = arith.constant 0 : index
    %c0_24 = arith.constant 0 : index
    %59 = vector.load %arg4[%c0_23, %c0_24] : memref<1x128xf32, #tpu.memory_space<vmem>>, vector<1x128xf32>
    tpu.vector_store %arg4[%c0_23, %c0_24], %58 {strides = array<i32>} : memref<1x128xf32, #tpu.memory_space<vmem>>, vector<1x128xf32>,
    return
  }
  func.func @transform_0(%arg0: i32) -> (i32, i32) {
    %c0_i32 = arith.constant 0 : i32
    %c0_i32_0 = arith.constant 0 : i32
    return %c0_i32, %arg0 : i32, i32
  }
  func.func @transform_1(%arg0: i32) -> i32 {
    %c0_i32 = arith.constant 0 : i32
    %c0_i32_0 = arith.constant 0 : i32
    return %c0_i32 : i32
  }
  func.func @transform_2(%arg0: i32) -> i32 {
    %c0_i32 = arith.constant 0 : i32
    %c0_i32_0 = arith.constant 0 : i32
    return %c0_i32 : i32
  }
  func.func @transform_3(%arg0: i32) -> (i32, i32) {
    %c0_i32 = arith.constant 0 : i32
    %c0_i32_0 = arith.constant 0 : i32
    return %c0_i32, %arg0 : i32, i32
  }
}

</mosaic_0001>

<bundles_post_ra>
// kernel: tpu_custom_call.1
= control target key start
LH: loop header
LB: loop body
LE: loop exit
PB: predicated region body
PF: predicated region fallthrough
CT: control target
= control target key end

     0   :  { %9 = vsyncpa [#allocation4], 0  ;;  %s249_s0 = inlined_call_operand.hbm [shape: f32[10,128], index: 0, kind: input, shape index: {}]   ;;  %s250_s1 = inlined_call_operand.vmem [shape: f32[10], index: 1, kind: input, shape index: {}]   ;;  %s251_s2 = inlined_call_operand.<no memory space> [shape: f32[1], index: 2, kind: input, shape index: {}]   ;;  %s252_s3 = inlined_call_operand.hbm [shape: f32[1,128], index: 3, kind: output, shape index: {}]  }
   0x1   :  { %10 = vsyncpa [#allocation6], 0 }
   0x2   :  { %11 = vsyncpa [#allocation5], 0  ;;  %s194_s12 = smov [#allocation3]   ;;  %s30_s16 = sshll.u32 %s250_s1, 4  ;;  %s31_s16 = int_to_ptr.vmem [resolvable:$true] %s30_s16 }
   0x3   :  { %s17_s13 = sshll.u32 %s194_s12, 4  ;;  %s132_s19 = scalar_lea.hbm %s249_s0, 256  ;;  %s18_s13 = int_to_ptr.vmem [resolvable:$true] %s17_s13 }
   0x4   :  { %p133_p0 = scmp.ne.s32.totalorder %s249_s0, %s132_s19  ;;  %p136_p1 = scmp.lt.u32.totalorder %s132_s19, %s249_s0 }
   0x6   :  { %p138_p2 = pnand %p136_p1, %p133_p0 }
   0x8   :  { %141 = shalt.err (!%p138_p2)
}
   0x9   :  { %s142_s24 = scalar_lea.vmem %s18_s13, 256  ;;  %p147_p4 = scmp.lt.s32.totalorder %s18_s13, %s18_s13 }
   0xa   :  { %p143_p3 = scmp.ne.s32.totalorder %s18_s13, %s142_s24  ;;  %p148_p5 = scmp.lt.s32.totalorder %s142_s24, %s142_s24 }
   0xc   :  { %p149_p6 = por %p148_p5, %p147_p4 }
   0xe   :  { %p150_p7 = pnand %p149_p6, %p143_p3 }
  0x10   :  { %153 = shalt.err (!%p150_p7)
}
  0x11   :  { %s195_s1 = smov 128   ;;  %s196_s25 = smov 8  }
  0x12   :  { %23 = dma.hbm_to_vmem [thread:$0]  %s249_s0, 256, %s18_s13, [#allocation4], %s195_s1, %s195_s1, %s196_s25  }
  0x13   :  { %s154_s28 = scalar_lea.vmem %s31_s16, 16  ;;  %p159_p9 = scmp.lt.s32.totalorder %s31_s16, %s31_s16 }
  0x14   :  { %p155_p8 = scmp.ne.s32.totalorder %s31_s16, %s154_s28  ;;  %p160_p10 = scmp.lt.s32.totalorder %s154_s28, %s154_s28 }
  0x16   :  { %p161_p11 = por %p160_p10, %p159_p9 }
  0x18   :  { %p162_p12 = pnand %p161_p11, %p155_p8 }
  0x1a   :  { %165 = shalt.err (!%p162_p12)
}
  0x1b   :  { %s197_s29 = smov [#allocation7]  }
  0x1c   :  { %33 = dma.vmem_to_smem %s31_s16, 16, %s197_s29, [#allocation6]  }
  0x1d   :  { %188 = dma.done.wait [#allocation4], 256  }
  0x1e   :  { %189 = vsyncadd [#allocation4], 4294967040 }
  0x1f   :  { %190 = dma.done.wait [#allocation6], 16  }
  0x20   :  { %191 = vsyncadd [#allocation6], 4294967280 }
  0x21   :  { %42 = sfence }
  0x22   :  { %s46_s30 = sld [smem:[#allocation7]]  ;;  %s116_s4 = sld [smem:[#allocation7 + $0x1]]  ;;  %v45_v0 = vld [vmem:[#allocation3] sm:$0x1]  ;;  %v50_v1 = vld [vmem:[#allocation3 + $0x1] sm:$0x1]  ;;  %v44_v2 = vstv %s251_s2 }
  0x23   :  { %s117_s5 = sld [smem:[#allocation7 + $0x2]]  ;;  %s118_s6 = sld [smem:[#allocation7 + $0x3]]  ;;  %v55_v4 = vld [vmem:[#allocation3 + $0x2] sm:$0x1]  ;;  %v60_v9 = vld [vmem:[#allocation3 + $0x3] sm:$0x1] }
  0x24   :  { %s119_s0 = sld [smem:[#allocation7 + $0x4]]  ;;  %s120_s7 = sld [smem:[#allocation7 + $0x5]]  ;;  %v65_v13 = vld [vmem:[#allocation3 + $0x4] sm:$0x1]  ;;  %v70_v17 = vld [vmem:[#allocation3 + $0x5] sm:$0x1] }
  0x25   :  { %s121_s10 = sld [smem:[#allocation7 + $0x6]]  ;;  %s122_s11 = sld [smem:[#allocation7 + $0x7]]  ;;  %v75_v21 = vld [vmem:[#allocation3 + $0x6] sm:$0x1]  ;;  %v80_v25 = vld [vmem:[#allocation3 + $0x7] sm:$0x1] }
  0x26   :  { %s123_s12 = sld [smem:[#allocation7 + $0x8]]  ;;  %s124_s2 = sld [smem:[#allocation7 + $0x9]]  ;;  %v85_v29 = vld [vmem:[#allocation3 + $0x8] sm:$0x1]  ;;  %v90_v33 = vld [vmem:[#allocation3 + $0x9] sm:$0x1] }
  0x27   :  { %s198_s13 = smov [#allocation8]  }
  0x28   :  { %v47_v3 = vstv %s46_s30  ;;  %v52_v6 = vstv %s116_s4  ;;  %s106_s14 = sshll.u32 %s198_s13, 4  ;;  %s107_s14 = int_to_ptr.vmem [resolvable:$true] %s106_s14 }
  0x29   :  { %v48_v5 = vmul.f32 %v47_v3, %v45_v0  ;;  %v57_v7 = vstv %s117_s5  ;;  %v53_v8 = vmul.f32 %v52_v6, %v50_v1  ;;  %v62_v10 = vstv %s118_s6  ;;  %s166_s15 = scalar_lea.vmem %s107_s14, 16  ;;  %s170_s16 = scalar_lea.vmem %s107_s14, 32 }
  0x2a   :  { %v58_v12 = vmul.f32 %v57_v7, %v55_v4  ;;  %v67_v14 = vstv %s119_s0  ;;  %v63_v16 = vmul.f32 %v62_v10, %v60_v9  ;;  %v72_v18 = vstv %s120_s7  ;;  %p167_p13 = scmp.ne.s32.totalorder %s107_s14, %s166_s15  ;;  %p171_p0 = scmp.lt.s32.totalorder %s107_s14, %s107_s14 }
  0x2b   :  { %v49_v11 = vadd.f32 %v48_v5, %v44_v2  ;;  %v68_v20 = vmul.f32 %v67_v14, %v65_v13  ;;  %v77_v22 = vstv %s121_s10  ;;  %v73_v24 = vmul.f32 %v72_v18, %v70_v17  ;;  %p172_p1 = scmp.lt.s32.totalorder %s170_s16, %s166_s15 }
  0x2c   :  { %v82_v26 = vstv %s122_s11  ;;  %v78_v28 = vmul.f32 %v77_v22, %v75_v21  ;;  %v87_v30 = vstv %s123_s12  ;;  %v92_v34 = vstv %s124_s2 }
  0x2d   :  { %v54_v15 = vadd.f32 %v53_v8, %v49_v11  ;;  %v83_v32 = vmul.f32 %v82_v26, %v80_v25  ;;  %v88_v36 = vmul.f32 %v87_v30, %v85_v29  ;;  %v93_v38 = vmul.f32 %v92_v34, %v90_v33  ;;  %p173_p2 = por %p172_p1, %p171_p0 }
  0x2f   :  { %v59_v19 = vadd.f32 %v58_v12, %v54_v15  ;;  %p174_p3 = pnand %p173_p2, %p167_p13 }
  0x31   :  { %v64_v23 = vadd.f32 %v63_v16, %v59_v19 }
  0x33   :  { %v69_v27 = vadd.f32 %v68_v20, %v64_v23 }
  0x35   :  { %v74_v31 = vadd.f32 %v73_v24, %v69_v27 }
  0x37   :  { %v79_v35 = vadd.f32 %v78_v28, %v74_v31 }
  0x39   :  { %v84_v37 = vadd.f32 %v83_v32, %v79_v35 }
  0x3b   :  { %v89_v39 = vadd.f32 %v88_v36, %v84_v37 }
  0x3d   :  { %v94_v40 = vadd.f32 %v93_v38, %v89_v39 }
  0x3f   :  { %v95_v41 = vmul.f32 0.5, %v94_v40 }
  0x41   :  { %130 = vtanh.f32 %v95_v41 }
  0x4b   :  { %v131_v42 = vpop.eup %130 }
  0x4c   :  { %v97_v43 = vadd.f32 1.0, %v131_v42 }
  0x4e   :  { %v98_v44 = vmul.f32 0.5, %v97_v43 }
  0x50   :  { %99 = vst [vmem:[#allocation8] sm:$0x1] %v98_v44 }
  0x51   :  { %177 = shalt.err (!%p174_p3)
}
  0x52   :  { %s178_s19 = scalar_lea.hbm %s252_s3, 16 }
  0x53   :  { %p179_p4 = scmp.ne.s32.totalorder %s252_s3, %s178_s19  ;;  %p182_p5 = scmp.lt.u32.totalorder %s178_s19, %s252_s3 }
  0x55   :  { %p184_p6 = pnand %p182_p5, %p179_p4 }
  0x57   :  { %187 = shalt.err (!%p184_p6)
}
  0x58   :  { %109 = dma.vmem_to_hbm [thread:$0]  %s107_s14, 16, %s252_s3, [#allocation5]  }
  0x59   :  { %192 = dma.done.wait [#allocation5], 16  }
  0x5a   :  { %193 = vsyncadd [#allocation5], 4294967280 }
  0x5b   :  { %113 = vsyncpa [#allocation4], 1 }
  0x5c   :  { %114 = vsyncpa [#allocation5], 1 }
  0x5d   :  { %115 = vsyncpa [#allocation6], 1 }

</bundles_post_ra>
